<compile_context>
chip_gen: v7x
topology: tpu7x:2x2x1
jax: 0.10.0
libtpu: 0.0.40
codegen_flags: <defaults>
</compile_context>

<pallas_src>
import functools

import jax
import jax.numpy as jnp
from jax.experimental import pallas as pl
from jax.experimental.pallas import tpu as pltpu

_LANE = 128      # vreg lane width (same on v5e/v6e/v7x)
_SUBLANE = 8     # f32 sublane count


def _round_up(n: int, m: int) -> int:
    return ((n + m - 1) // m) * m


def _two_layer_kernel(x_ref, w1_ref, b1_ref, w2_ref, b2_ref, o_ref):
    """Push one (tm, d_in_p) tile of rows through both layers.

    x_ref : (tm, d_in_p)        bf16
    w1_ref: (d_in_p,  d_hid_p)  bf16   b1_ref: (1, d_hid_p) f32
    w2_ref: (d_hid_p, d_out_p)  bf16   b2_ref: (1, d_out_p) f32
    o_ref : (tm, d_out_p)       f32
    """
    # h = tanh(x @ W1_t + b1): bf16 MXU matmul, f32 accumulation.
    h_pre = jnp.dot(x_ref[...], w1_ref[...],
                    preferred_element_type=jnp.float32) + b1_ref[...]
    h = jnp.tanh(h_pre)                                   # f32 on EUP (v5e-safe)

    # y = h @ W2_t + b2
    y = jnp.dot(h.astype(jnp.bfloat16), w2_ref[...],
                preferred_element_type=jnp.float32) + b2_ref[...]
    o_ref[...] = y.astype(o_ref.dtype)


def prepare_params(w1, b1, w2, b2):
    """One-time parameter prep (init time, NOT on the hot forward path).

    * transpose PyTorch (out, in) weights to (in, out) layout,
    * zero-pad every feature dim to a lane multiple (128),
    * cast weights to bf16 (MXU-native); keep biases in f32.
    Zero padding is exact: padded hidden lanes are tanh(0)=0 and multiply
    zero rows of W2_t; padded output lanes come out exactly 0 and are sliced.
    """
    w1 = jnp.asarray(w1, jnp.float32)
    b1 = jnp.asarray(b1, jnp.float32)
    w2 = jnp.asarray(w2, jnp.float32)
    b2 = jnp.asarray(b2, jnp.float32)

    d_hidden, d_input = w1.shape
    d_output = w2.shape[0]
    d_in_p = _round_up(d_input, _LANE)
    d_hid_p = _round_up(d_hidden, _LANE)
    d_out_p = _round_up(d_output, _LANE)

    w1_t = (jnp.zeros((d_in_p, d_hid_p), jnp.bfloat16)
            .at[:d_input, :d_hidden].set(w1.T.astype(jnp.bfloat16)))
    b1_r = jnp.zeros((1, d_hid_p), jnp.float32).at[0, :d_hidden].set(b1)
    w2_t = (jnp.zeros((d_hid_p, d_out_p), jnp.bfloat16)
            .at[:d_hidden, :d_output].set(w2.T.astype(jnp.bfloat16)))
    b2_r = jnp.zeros((1, d_out_p), jnp.float32).at[0, :d_output].set(b2)

    return {"w1_t": w1_t, "b1": b1_r, "w2_t": w2_t, "b2": b2_r,
            "d_input": d_input, "d_output": d_output}


@functools.partial(jax.jit, static_argnames=("d_output",))
def two_layer_net_batched(xb, w1_t, b1_row, w2_t, b2_row, *, d_output):
    """Batched forward: xb (M, d_input) -> (M, d_output).

    Grid over row tiles; weights/biases resident across grid steps.
    """
    m, d_input = xb.shape
    d_in_p, d_hid_p = w1_t.shape
    d_out_p = w2_t.shape[1]

    # Row tile: 128 fills the v5e 128x128 MXU per pass (fine on v6e/v7x too);
    # for small M use one sublane-aligned tile.
    tm = 128 if m >= 128 else _round_up(m, _SUBLANE)
    m_p = _round_up(m, tm)

    # Pad rows to the tile and features to the lane-padded width, cast to bf16.
    x_pad = jnp.zeros((m_p, d_in_p), jnp.bfloat16)
    x_pad = x_pad.at[:m, :d_input].set(xb.astype(jnp.bfloat16))

    bytes_accessed = (
        x_pad.size * 2 + w1_t.size * 2 + w2_t.size * 2
        + b1_row.size * 4 + b2_row.size * 4 + m_p * d_out_p * 4)

    out = pl.pallas_call(
        _two_layer_kernel,
        out_shape=jax.ShapeDtypeStruct((m_p, d_out_p), jnp.float32),
        grid=(m_p // tm,),
        in_specs=[
            pl.BlockSpec((tm, d_in_p), lambda i: (i, 0)),        # x rows: per step
            pl.BlockSpec((d_in_p, d_hid_p), lambda i: (0, 0)),   # W1_t : resident
            pl.BlockSpec((1, d_hid_p), lambda i: (0, 0)),        # b1   : resident
            pl.BlockSpec((d_hid_p, d_out_p), lambda i: (0, 0)),  # W2_t : resident
            pl.BlockSpec((1, d_out_p), lambda i: (0, 0)),        # b2   : resident
        ],
        out_specs=pl.BlockSpec((tm, d_out_p), lambda i: (i, 0)),
        compiler_params=pltpu.CompilerParams(
            # Row tiles are independent -> shard across v7x's 2 TensorCores.
            dimension_semantics=("parallel",),
        ),
        cost_estimate=pl.CostEstimate(
            flops=2 * m_p * (d_in_p * d_hid_p + d_hid_p * d_out_p)
                  + m_p * (d_hid_p + d_out_p),           # bias adds
            transcendentals=m_p * d_hid_p,               # tanh
            bytes_accessed=bytes_accessed,
        ),
    )(x_pad, w1_t, b1_row, w2_t, b2_row)

    return out[:m, :d_output]


def two_layer_net(x, params):
    """Forward matching PyTorch TwoLayerNet.forward: x.view(1, -1) -> (1, d_out)."""
    x2d = jnp.asarray(x, jnp.float32).reshape(1, -1)
    return two_layer_net_batched(
        x2d, params["w1_t"], params["b1"], params["w2_t"], params["b2"],
        d_output=params["d_output"])


if __name__ == "__main__":
    d_input, d_hidden, d_output = 32, 64, 16

    key = jax.random.PRNGKey(0)
    kx, kxb, kw1, kb1, kw2, kb2 = jax.random.split(key, 6)

    # PyTorch nn.Linear-style parameters: weight (out, in), bias (out,).
    bound1 = 1.0 / (d_input ** 0.5)
    bound2 = 1.0 / (d_hidden ** 0.5)
    w1 = jax.random.uniform(kw1, (d_hidden, d_input), jnp.float32, -bound1, bound1)
    b1 = jax.random.uniform(kb1, (d_hidden,), jnp.float32, -bound1, bound1)
    w2 = jax.random.uniform(kw2, (d_output, d_hidden), jnp.float32, -bound2, bound2)
    b2 = jax.random.uniform(kb2, (d_output,), jnp.float32, -bound2, bound2)

    params = prepare_params(w1, b1, w2, b2)

    # Reference using the same bf16 operand quantization the kernel uses
    # (f32 accumulation / bias / tanh) -> tight tolerance.
    def ref_fwd(xin2d):
        xq = xin2d.astype(jnp.bfloat16).astype(jnp.float32)
        w1q = w1.astype(jnp.bfloat16).astype(jnp.float32)
        w2q = w2.astype(jnp.bfloat16).astype(jnp.float32)
        h = jnp.tanh(jnp.dot(xq, w1q.T, precision=jax.lax.Precision.HIGHEST) + b1)
        hq = h.astype(jnp.bfloat16).astype(jnp.float32)
        return jnp.dot(hq, w2q.T, precision=jax.lax.Precision.HIGHEST) + b2

    # ---- Module-faithful forward: single input vector, x.view(1, -1). ----
    x = jax.random.normal(kx, (d_input,), jnp.float32)
    y = two_layer_net(x, params)
    jax.block_until_ready(y)
    assert y.shape == (1, d_output)

    x2d = x.reshape(1, -1)
    ref_q = ref_fwd(x2d)
    ref_f32 = jnp.tanh(x2d @ w1.T + b1) @ w2.T + b2
    assert jnp.allclose(y, ref_q, atol=2e-3, rtol=2e-3)      # same quantization
    assert jnp.allclose(y, ref_f32, atol=1e-1, rtol=1e-1)    # pure-f32 PyTorch math

    # ---- Batched path: amortizes weight DMA + prologue, exercises the grid. ----
    xb = jax.random.normal(kxb, (130, d_input), jnp.float32)
    yb = two_layer_net_batched(xb, params["w1_t"], params["b1"],
                               params["w2_t"], params["b2"],
                               d_output=params["d_output"])
    jax.block_until_ready(yb)
    assert yb.shape == (130, d_output)
    assert jnp.allclose(yb, ref_fwd(xb), atol=2e-3, rtol=2e-3)

    print("KERNEL_OK")
</pallas_src>

<mosaic_0001>
module attributes {stable_mosaic.version = 11 : i64} {
  func.func @_two_layer_kernel(%arg0: i32, %arg1: memref<8x128xbf16, #tpu.memory_space<vmem>>, %arg2: memref<128x128xbf16, #tpu.memory_space<vmem>>, %arg3: memref<1x128xf32, #tpu.memory_space<vmem>>, %arg4: memref<128x128xbf16, #tpu.memory_space<vmem>>, %arg5: memref<1x128xf32, #tpu.memory_space<vmem>>, %arg6: memref<8x128xf32, #tpu.memory_space<vmem>>) attributes {dimension_semantics = [#tpu.dimension_semantics<parallel>], iteration_bounds = array<i64: 1>, scalar_prefetch = 0 : i64, scratch_operands = 0 : i64, tpu.core_type = #tpu.core_type<tc>, window_params = [{transform_indices = @transform_0, window_bounds = array<i64: 8, 128>}, {pipeline_mode = #tpu.pipeline_mode<synchronous>, transform_indices = @transform_1, window_bounds = array<i64: 128, 128>}, {pipeline_mode = #tpu.pipeline_mode<synchronous>, transform_indices = @transform_2, window_bounds = array<i64: 1, 128>}, {pipeline_mode = #tpu.pipeline_mode<synchronous>, transform_indices = @transform_3, window_bounds = array<i64: 128, 128>}, {pipeline_mode = #tpu.pipeline_mode<synchronous>, transform_indices = @transform_4, window_bounds = array<i64: 1, 128>}, {transform_indices = @transform_5, window_bounds = array<i64: 8, 128>}]} {
    %c0 = arith.constant 0 : index
    %c0_0 = arith.constant 0 : index
    %0 = vector.load %arg1[%c0, %c0_0] : memref<8x128xbf16, #tpu.memory_space<vmem>>, vector<8x128xbf16>
    %c0_1 = arith.constant 0 : index
    %c0_2 = arith.constant 0 : index
    %1 = vector.load %arg2[%c0_1, %c0_2] : memref<128x128xbf16, #tpu.memory_space<vmem>>, vector<128x128xbf16>
    %cst = arith.constant dense<0.000000e+00> : vector<8x128xf32>
    %2 = tpu.matmul %0, %1, %cst {dimension_numbers = #tpu.dot_dimension_numbers<[1], [0], [0], [1], [0, 0, 1, 1], [], []>} : vector<8x128xbf16>, vector<128x128xbf16>, vector<8x128xf32> -> vector<8x128xf32>
    %c0_3 = arith.constant 0 : index
    %c0_4 = arith.constant 0 : index
    %3 = vector.load %arg3[%c0_3, %c0_4] : memref<1x128xf32, #tpu.memory_space<vmem>>, vector<1x128xf32>
    %4 = vector.broadcast %3 : vector<1x128xf32> to vector<8x128xf32>
    %5 = arith.addf %2, %4 : vector<8x128xf32>
    %6 = math.tanh %5 : vector<8x128xf32>
    %7 = arith.truncf %6 : vector<8x128xf32> to vector<8x128xbf16>
    %c0_5 = arith.constant 0 : index
    %c0_6 = arith.constant 0 : index
    %8 = vector.load %arg4[%c0_5, %c0_6] : memref<128x128xbf16, #tpu.memory_space<vmem>>, vector<128x128xbf16>
    %cst_7 = arith.constant dense<0.000000e+00> : vector<8x128xf32>
    %9 = tpu.matmul %7, %8, %cst_7 {dimension_numbers = #tpu.dot_dimension_numbers<[1], [0], [0], [1], [0, 0, 1, 1], [], []>} : vector<8x128xbf16>, vector<128x128xbf16>, vector<8x128xf32> -> vector<8x128xf32>
    %c0_8 = arith.constant 0 : index
    %c0_9 = arith.constant 0 : index
    %10 = vector.load %arg5[%c0_8, %c0_9] : memref<1x128xf32, #tpu.memory_space<vmem>>, vector<1x128xf32>
    %11 = vector.broadcast %10 : vector<1x128xf32> to vector<8x128xf32>
    %12 = arith.addf %9, %11 : vector<8x128xf32>
    %c0_10 = arith.constant 0 : index
    %c0_11 = arith.constant 0 : index
    %13 = vector.load %arg6[%c0_10, %c0_11] : memref<8x128xf32, #tpu.memory_space<vmem>>, vector<8x128xf32>
    tpu.vector_store %arg6[%c0_10, %c0_11], %12 {strides = array<i32>} : memref<8x128xf32, #tpu.memory_space<vmem>>, vector<8x128xf32>,
    return
  }
  func.func @transform_0(%arg0: i32) -> (i32, i32) {
    %c0_i32 = arith.constant 0 : i32
    %c0_i32_0 = arith.constant 0 : i32
    return %arg0, %c0_i32 : i32, i32
  }
  func.func @transform_1(%arg0: i32) -> (i32, i32) {
    %c0_i32 = arith.constant 0 : i32
    %c0_i32_0 = arith.constant 0 : i32
    %c0_i32_1 = arith.constant 0 : i32
    return %c0_i32, %c0_i32_0 : i32, i32
  }
  func.func @transform_2(%arg0: i32) -> (i32, i32) {
    %c0_i32 = arith.constant 0 : i32
    %c0_i32_0 = arith.constant 0 : i32
    %c0_i32_1 = arith.constant 0 : i32
    return %c0_i32, %c0_i32_0 : i32, i32
  }
  func.func @transform_3(%arg0: i32) -> (i32, i32) {
    %c0_i32 = arith.constant 0 : i32
    %c0_i32_0 = arith.constant 0 : i32
    %c0_i32_1 = arith.constant 0 : i32
    return %c0_i32, %c0_i32_0 : i32, i32
  }
  func.func @transform_4(%arg0: i32) -> (i32, i32) {
    %c0_i32 = arith.constant 0 : i32
    %c0_i32_0 = arith.constant 0 : i32
    %c0_i32_1 = arith.constant 0 : i32
    return %c0_i32, %c0_i32_0 : i32, i32
  }
  func.func @transform_5(%arg0: i32) -> (i32, i32) {
    %c0_i32 = arith.constant 0 : i32
    %c0_i32_0 = arith.constant 0 : i32
    return %arg0, %c0_i32 : i32, i32
  }
}

</mosaic_0001>

<bundles_post_ra>
// kernel: two_layer_net_batched.1
= control target key start
LH: loop header
LB: loop body
LE: loop exit
PB: predicated region body
PF: predicated region fallthrough
CT: control target
= control target key end

     0   :  { %10 = vsyncpa [#allocation3], 0  ;;  %s501_s0 = inlined_call_operand.vmem [shape: bf16[8,128], index: 0, kind: input, shape index: {}]   ;;  %s502_s1 = inlined_call_operand.hbm [shape: bf16[128,128], index: 1, kind: input, shape index: {}]   ;;  %s503_s2 = inlined_call_operand.vmem [shape: f32[1,128], index: 2, kind: input, shape index: {}]   ;;  %s504_s3 = inlined_call_operand.hbm [shape: bf16[128,128], index: 3, kind: input, shape index: {}]   ;;  %s505_s4 = inlined_call_operand.vmem [shape: f32[1,128], index: 4, kind: input, shape index: {}]   ;;  %s506_s5 = inlined_call_operand.vmem [shape: f32[8,128], index: 5, kind: output, shape index: {}]  }
   0x1   :  { %11 = vsyncpa [#allocation5], 0  ;;  %s429_s18 = smov [#allocation2]   ;;  %s381_s22 = scalar_lea.hbm %s502_s1, 1024 }
   0x2   :  { %s19_s19 = sshll.u32 %s429_s18, 4  ;;  %p382_p0 = scmp.ne.s32.totalorder %s502_s1, %s381_s22  ;;  %s20_s19 = int_to_ptr.vmem [resolvable:$true] %s19_s19 }
   0x3   :  { %p385_p1 = scmp.lt.u32.totalorder %s381_s22, %s502_s1 }
   0x5   :  { %p387_p2 = pnand %p385_p1, %p382_p0 }
   0x7   :  { %390 = shalt.err (!%p387_p2)
}
   0x8   :  { %s391_s27 = scalar_lea.vmem %s20_s19, 1024  ;;  %p396_p4 = scmp.lt.s32.totalorder %s20_s19, %s20_s19 }
   0x9   :  { %p392_p3 = scmp.ne.s32.totalorder %s20_s19, %s391_s27  ;;  %p397_p5 = scmp.lt.s32.totalorder %s391_s27, %s391_s27 }
   0xb   :  { %p398_p6 = por %p397_p5, %p396_p4 }
   0xd   :  { %p399_p7 = pnand %p398_p6, %p392_p3 }
   0xf   :  { %402 = shalt.err (!%p399_p7)
}
  0x10   :  { %s430_s28 = smov 64   ;;  %s431_s29 = smov 4  }
  0x11   :  { %25 = dma.hbm_to_vmem [thread:$0]  %s502_s1, 1024, %s20_s19, [#allocation3], %s430_s28, %s430_s28, %s431_s29  }
  0x12   :  { %s432_s7 = smov [#allocation4]   ;;  %s403_s11 = scalar_lea.hbm %s504_s3, 1024 }
  0x13   :  { %s33_s8 = sshll.u32 %s432_s7, 4  ;;  %p404_p8 = scmp.ne.s32.totalorder %s504_s3, %s403_s11  ;;  %s34_s8 = int_to_ptr.vmem [resolvable:$true] %s33_s8 }
  0x14   :  { %p407_p9 = scmp.lt.u32.totalorder %s403_s11, %s504_s3 }
  0x16   :  { %p409_p10 = pnand %p407_p9, %p404_p8 }
  0x18   :  { %412 = shalt.err (!%p409_p10)
}
  0x19   :  { %s413_s16 = scalar_lea.vmem %s34_s8, 1024  ;;  %p418_p12 = scmp.lt.s32.totalorder %s34_s8, %s34_s8 }
  0x1a   :  { %p414_p11 = scmp.ne.s32.totalorder %s34_s8, %s413_s16  ;;  %p419_p13 = scmp.lt.s32.totalorder %s413_s16, %s413_s16 }
  0x1c   :  { %p420_p0 = por %p419_p13, %p418_p12 }
  0x1e   :  { %p421_p1 = pnand %p420_p0, %p414_p11 }
  0x20   :  { %424 = shalt.err (!%p421_p1)
}
  0x21   :  { %39 = dma.hbm_to_vmem [thread:$0]  %s504_s3, 1024, %s34_s8, [#allocation5], %s430_s28, %s430_s28, %s431_s29  }
  0x22   :  { %425 = dma.done.wait [#allocation3], 1024  }
  0x23   :  { %426 = vsyncadd [#allocation3], 4294966272 }
  0x24   :  { %427 = dma.done.wait [#allocation5], 1024  }
  0x25   :  { %428 = vsyncadd [#allocation5], 4294966272  ;;  %v433_v0 = vmov 0.0   ;;  %vm434_vm0 = vmmov 0   ;;  %v363_v1 = vld [vmem:[#allocation2] sm:$0xff]   ;;  %v364_v2 = vld [vmem:[#allocation2 + $0x8] sm:$0xff]  }
  0x26   :  { %317 = vmatprep.subr.bf16.mxu0 %v433_v0  ;;  %333 = vmatprep.mubr.msk.bf16.mxu0 %vm434_vm0, %v433_v0  ;;  %v365_v3 = vld [vmem:[#allocation2 + $0x10] sm:$0xff]   ;;  %v371_v4 = vld [vmem:[#allocation4] sm:$0xff]   ;;  %v366_v5 = vld [vmem:[#allocation2 + $0x18] sm:$0xff]  }
  0x27   :  { %337 = vmatprep.subr.bf16.mxu1 %v433_v0  ;;  %353 = vmatprep.mubr.msk.bf16.mxu1 %vm434_vm0, %v433_v0  ;;  %v372_v6 = vld [vmem:[#allocation4 + $0x8] sm:$0xff]   ;;  %v367_v7 = vld [vmem:[#allocation2 + $0x20] sm:$0xff]   ;;  %v373_v8 = vld [vmem:[#allocation4 + $0x10] sm:$0xff]  }
  0x28   :  { %318 = vmatpush3.bf16.msra.mxu0 %v363_v1  ;;  %338 = vmatpush3.bf16.msra.mxu1 %v371_v4  ;;  %v368_v9 = vld [vmem:[#allocation2 + $0x28] sm:$0xff]   ;;  %v374_v10 = vld [vmem:[#allocation4 + $0x18] sm:$0xff]   ;;  %v369_v11 = vld [vmem:[#allocation2 + $0x30] sm:$0xff]  }
  0x29   :  { %319 = vmatprep.subr.bf16.mxu0 %v433_v0  ;;  %339 = vmatprep.subr.bf16.mxu1 %v433_v0  ;;  %v370_v12 = vld [vmem:[#allocation2 + $0x38] sm:$0xff]   ;;  %v49_v13 = vld [vmem:[%s501_s0] sm:$0xf]  ;;  %v376_v15 = vld [vmem:[#allocation4 + $0x28] sm:$0xff]  }
  0x2a   :  { %v375_v14 = vld [vmem:[#allocation4 + $0x20] sm:$0xff]   ;;  %v377_v16 = vld [vmem:[#allocation4 + $0x30] sm:$0xff]   ;;  %v378_v17 = vld [vmem:[#allocation4 + $0x38] sm:$0xff]  }
  0x2b   :  { %v281_v18 = vld [vmem:[%s503_s2] ss:$0 sm:$0xff] }
  0x2c   :  { %320 = vmatpush3.bf16.msra.mxu0 %v364_v2  ;;  %340 = vmatpush3.bf16.msra.mxu1 %v372_v6  ;;  %v290_v26 = vld [vmem:[%s505_s4] ss:$0 sm:$0xff] }
  0x2d   :  { %321 = vmatprep.subr.bf16.mxu0 %v433_v0  ;;  %341 = vmatprep.subr.bf16.mxu1 %v433_v0 }
  0x30   :  { %322 = vmatpush3.bf16.msra.mxu0 %v365_v3  ;;  %342 = vmatpush3.bf16.msra.mxu1 %v373_v8 }
  0x31   :  { %323 = vmatprep.subr.bf16.mxu0 %v433_v0  ;;  %343 = vmatprep.subr.bf16.mxu1 %v433_v0 }
  0x34   :  { %324 = vmatpush3.bf16.msra.mxu0 %v366_v5  ;;  %344 = vmatpush3.bf16.msra.mxu1 %v374_v10 }
  0x35   :  { %325 = vmatprep.subr.bf16.mxu0 %v433_v0  ;;  %345 = vmatprep.subr.bf16.mxu1 %v433_v0 }
  0x38   :  { %326 = vmatpush3.bf16.msra.mxu0 %v367_v7  ;;  %346 = vmatpush3.bf16.msra.mxu1 %v375_v14 }
  0x39   :  { %327 = vmatprep.subr.bf16.mxu0 %v433_v0  ;;  %347 = vmatprep.subr.bf16.mxu1 %v433_v0 }
  0x3c   :  { %328 = vmatpush3.bf16.msra.mxu0 %v368_v9  ;;  %348 = vmatpush3.bf16.msra.mxu1 %v376_v15 }
  0x3d   :  { %329 = vmatprep.subr.bf16.mxu0 %v433_v0  ;;  %349 = vmatprep.subr.bf16.mxu1 %v433_v0 }
  0x40   :  { %330 = vmatpush3.bf16.msra.mxu0 %v369_v11  ;;  %350 = vmatpush3.bf16.msra.mxu1 %v377_v16 }
  0x41   :  { %331 = vmatprep.subr.bf16.mxu0 %v433_v0  ;;  %351 = vmatprep.subr.bf16.mxu1 %v433_v0 }
  0x44   :  { %332 = vmatpush3.bf16.msra.mxu0 %v370_v12  ;;  %352 = vmatpush3.bf16.msra.mxu1 %v378_v17 }
  0x47   :  { %334 = vmatmul.mubr.bf16.vlgmr.msra.gmra.mrb[0].mxu0 %v49_v13 }
 0x11a   :  { %v155_v19 = vpop.f32.mrb[0].mxu0 }
 0x11b   :  { %v156_v20 = vadd.f32 %v281_v18, %v155_v19  ;;  %v335_v21 = vpop.f32.mrb[1].mxu0 }
 0x11c   :  { %v158_v22 = vpop.f32.mrb[2].mxu0 }
 0x11d   :  { %379 = vtanh.f32 %v156_v20  ;;  %v336_v23 = vpop.f32.mrb[3].mxu0 }
 0x127   :  { %v380_v24 = vpop.eup %379 }
 0x128   :  { %v162_v25 = vpack.c.bf16 %v380_v24, %v380_v24 }
 0x12a   :  { %354 = vmatmul.mubr.bf16.vlgmr.msra.gmra.mrb[0].mxu1 %v162_v25 }
 0x1fd   :  { %v268_v27 = vpop.f32.mrb[0].mxu1 }
 0x1fe   :  { %v269_v28 = vadd.f32 %v290_v26, %v268_v27  ;;  %v355_v29 = vpop.f32.mrb[1].mxu1 }
 0x1ff   :  { %v271_v30 = vpop.f32.mrb[2].mxu1 }
 0x200   :  { %274 = vst [vmem:[%s506_s5] sm:$0xff] %v269_v28  ;;  %v356_v31 = vpop.f32.mrb[3].mxu1 }
 0x201   :  { %279 = vsyncpa [#allocation3], 1 }
 0x202   :  { %280 = vsyncpa [#allocation5], 1 }

</bundles_post_ra>
